<compile_context>
chip_gen: v7x
topology: tpu7x:2x2x1
jax: 0.10.0
libtpu: 0.0.40
codegen_flags: <defaults>
</compile_context>

<pallas_src>
import functools
import math

import jax
import jax.numpy as jnp
from jax.experimental import pallas as pl
from jax.experimental.pallas import tpu as pltpu

_LANE = 128


def _round_up(n, m):
    return ((n + m - 1) // m) * m


def _pad2(a, rows, cols):
    pr, pc = rows - a.shape[0], cols - a.shape[1]
    if pr == 0 and pc == 0:
        return a
    return jnp.pad(a, ((0, pr), (0, pc)))


# ----------------- generation-aware knobs (computed once at import) ----------------- #
def _tpu_knobs():
    kind = ""
    try:
        kind = jax.devices()[0].device_kind.lower()
    except Exception:
        pass
    vmem_bytes = None
    try:
        vmem_bytes = int(pltpu.get_tpu_info().vmem_capacity_bytes)
    except Exception:
        vmem_bytes = None
    if vmem_bytes is None:
        # v7x has 64 MiB VMEM per TensorCore; v5e/v6e have 128 MiB.
        vmem_bytes = 64 * 1024 * 1024 if "v7" in kind else 128 * 1024 * 1024
    # leave headroom for Pallas double buffers / internal scratch
    vmem_limit = min(int(vmem_bytes * 3 // 4), 100 * 1024 * 1024)
    n_cores = 2 if "v7" in kind else 1          # v7x: 2 TensorCores per chip
    target_rows = 1024 if vmem_bytes >= 96 * 1024 * 1024 else 512
    return vmem_limit, n_cores, target_rows


_VMEM_LIMIT_BYTES, _N_TENSORCORES, _TARGET_ROWS = _tpu_knobs()


def _pick_tb(batch, seq, target_rows, n_cores):
    """Batch tile: big enough to fill the MXU with TB*L rows per step, small enough
    that the 'parallel' batch grid has >= n_cores steps (megacore sharding on v7x).
    The wrapper pads B up to a multiple of TB, so TB need not divide B exactly."""
    cap = max(1, target_rows // max(seq, 1))
    per_core = max(1, -(-batch // n_cores))     # ceil(batch / n_cores)
    return max(1, min(cap, batch, per_core))


# ------------------------------------ kernel ------------------------------------ #
def _padded_layer_norm(x, gamma, beta, d_real, eps=1e-5):
    """LayerNorm over the first d_real columns of a lane-padded [rows, Dp] slab.
    Relies on padded columns of x being exactly zero (true by construction) and on
    gamma/beta being zero-padded, so the padded output columns also stay exactly zero."""
    inv_d = 1.0 / d_real
    mu = jnp.sum(x, axis=-1, keepdims=True) * inv_d
    var = jnp.maximum(jnp.sum(x * x, axis=-1, keepdims=True) * inv_d - mu * mu, 0.0)
    return (x - mu) * jax.lax.rsqrt(var + eps) * gamma + beta


def encoder_layer_kernel(x_ref, wqkv_ref, wo_ref, w1_ref, b1_ref, w2_ref,
                         b2_ref, ln_ref, o_ref, *, d_model):
    f32, bf16 = jnp.float32, jnp.bfloat16
    tb, seq, dp = x_ref.shape
    rows = tb * seq

    x2 = x_ref[...].astype(f32).reshape(rows, dp)             # [rows, Dp] row slab

    # ---- fused Q/K/V projection (bf16 MXU operands, f32 accumulate) ----
    qkv = jnp.dot(x2.astype(bf16), wqkv_ref[...],
                  preferred_element_type=f32).astype(bf16)     # [rows, 3*Dp] bf16
    q = qkv[:, 0 * dp:1 * dp].reshape(tb, seq, dp)             # 1/sqrt(D) folded into wq
    k = qkv[:, 1 * dp:2 * dp].reshape(tb, seq, dp)
    v = qkv[:, 2 * dp:3 * dp].reshape(tb, seq, dp)

    # ---- scaled dot-product attention (batched; contracts last dims, no k.T) ----
    s = jnp.einsum("bqd,bkd->bqk", q, k, preferred_element_type=f32)   # [TB, L, L] f32
    s = s - jnp.max(s, axis=-1, keepdims=True)
    p = jnp.exp(s)
    p = p * pl.reciprocal(jnp.sum(p, axis=-1, keepdims=True), approx=True)
    ctx = jnp.einsum("bqk,bkd->bqd", p.astype(bf16), v,
                     preferred_element_type=f32)                       # [TB, L, Dp]
    new_x = jnp.dot(ctx.reshape(rows, dp).astype(bf16), wo_ref[...],
                    preferred_element_type=f32)                        # [rows, Dp]

    # residual + LayerNorm1 (dropout == identity in eval)
    xn = _padded_layer_norm(x2 + new_x, ln_ref[0:1, :], ln_ref[1:2, :], d_model)

    # ---- FFN: Conv1d(k=1) -> relu -> Conv1d(k=1) == two pointwise matmuls ----
    y = jnp.dot(xn.astype(bf16), w1_ref[...], preferred_element_type=f32)
    y = jnp.maximum(y + b1_ref[...], 0.0)
    y = jnp.dot(y.astype(bf16), w2_ref[...], preferred_element_type=f32) + b2_ref[...]

    out = _padded_layer_norm(xn + y, ln_ref[2:3, :], ln_ref[3:4, :], d_model)
    o_ref[...] = out.reshape(tb, seq, dp).astype(o_ref.dtype)


# --------------------------------- host wrappers --------------------------------- #
def prepare_params(params):
    """One-time weight prep: fuse QKV, fold the softmax scale into the Q columns,
    zero-pad to 128-lane multiples, cast MXU operands to bf16.  Call once and reuse."""
    D = params["wq"].shape[0]
    d_ff = params["w1"].shape[-1]
    Dp, Fp = _round_up(D, _LANE), _round_up(d_ff, _LANE)
    scale = 1.0 / math.sqrt(D)
    wqkv = jnp.concatenate(
        [_pad2(params["wq"] * scale, Dp, Dp),
         _pad2(params["wk"], Dp, Dp),
         _pad2(params["wv"], Dp, Dp)], axis=1).astype(jnp.bfloat16)    # [Dp, 3*Dp]
    wo = _pad2(params["wo"], Dp, Dp).astype(jnp.bfloat16)              # [Dp, Dp]
    w1 = _pad2(params["w1"], Dp, Fp).astype(jnp.bfloat16)              # [Dp, Fp]
    w2 = _pad2(params["w2"], Fp, Dp).astype(jnp.bfloat16)              # [Fp, Dp]
    b1 = _pad2(params["b1"], 1, Fp)                                    # f32 [1, Fp]
    b2 = _pad2(params["b2"], 1, Dp)                                    # f32 [1, Dp]
    ln = jnp.concatenate(
        [_pad2(params[n], 1, Dp) for n in ("g1", "be1", "g2", "be2")], axis=0)  # [4, Dp]
    return {"wqkv": wqkv, "wo": wo, "w1": w1, "b1": b1, "w2": w2, "b2": b2,
            "ln": ln, "d_model": D}


@functools.partial(jax.jit, static_argnames=("d_model",))
def _encoder_layer_impl(x, wqkv, wo, w1, b1, w2, b2, ln, *, d_model):
    B, L, D = x.shape
    Dp = wqkv.shape[0]
    TB = _pick_tb(B, L, _TARGET_ROWS, _N_TENSORCORES)
    Bp = _round_up(B, TB)

    # lane-dense activations: pad d_model up to 128 lanes, batch up to a multiple of TB.
    # Fused with the kernel under this jit -> one dispatch, no extra eager HBM round-trips.
    x_p = jnp.pad(x, ((0, Bp - B), (0, 0), (0, Dp - D)))
    weights = (wqkv, wo, w1, b1, w2, b2, ln)

    def wspec(w):
        # constant block index across the grid -> weights stay VMEM-resident
        return pl.BlockSpec(w.shape, lambda b, _nd=w.ndim: (0,) * _nd)

    out_p = pl.pallas_call(
        functools.partial(encoder_layer_kernel, d_model=d_model),
        out_shape=jax.ShapeDtypeStruct((Bp, L, Dp), x.dtype),
        grid_spec=pltpu.PrefetchScalarGridSpec(
            num_scalar_prefetch=0,
            grid=(Bp // TB,),
            in_specs=[pl.BlockSpec((TB, L, Dp), lambda b: (b, 0, 0))]
                     + [wspec(w) for w in weights],
            out_specs=pl.BlockSpec((TB, L, Dp), lambda b: (b, 0, 0)),
        ),
        compiler_params=pltpu.CompilerParams(
            dimension_semantics=("parallel",),
            vmem_limit_bytes=_VMEM_LIMIT_BYTES,
        ),
    )(x_p, *weights)
    return out_p[:B, :, :D]


def encoder_layer(x, prepared):
    """x: [B, L, D] float32.  prepared: output of prepare_params()."""
    return _encoder_layer_impl(
        x, prepared["wqkv"], prepared["wo"], prepared["w1"], prepared["b1"],
        prepared["w2"], prepared["b2"], prepared["ln"],
        d_model=prepared["d_model"])


def init_params(key, d_model, d_ff):
    ks = jax.random.split(key, 8)
    scale = 0.05
    return {
        "wq": scale * jax.random.normal(ks[0], (d_model, d_model), jnp.float32),
        "wk": scale * jax.random.normal(ks[1], (d_model, d_model), jnp.float32),
        "wv": scale * jax.random.normal(ks[2], (d_model, d_model), jnp.float32),
        "wo": scale * jax.random.normal(ks[3], (d_model, d_model), jnp.float32),
        # conv1: Conv1d(d_model -> d_ff, k=1) stored as [D, d_ff] for x @ W
        "w1": scale * jax.random.normal(ks[4], (d_model, d_ff), jnp.float32),
        "b1": scale * jax.random.normal(ks[5], (1, d_ff), jnp.float32),
        # conv2: Conv1d(d_ff -> d_model, k=1)
        "w2": scale * jax.random.normal(ks[6], (d_ff, d_model), jnp.float32),
        "b2": scale * jax.random.normal(ks[7], (1, d_model), jnp.float32),
        # layer norms
        "g1": jnp.ones((1, d_model), jnp.float32),
        "be1": jnp.zeros((1, d_model), jnp.float32),
        "g2": jnp.ones((1, d_model), jnp.float32),
        "be2": jnp.zeros((1, d_model), jnp.float32),
    }


# --------------------------- pure-JAX f32 reference --------------------------- #
def _layer_norm_ref(x, g, b, eps=1e-5):
    mu = jnp.mean(x, axis=-1, keepdims=True)
    var = jnp.mean((x - mu) ** 2, axis=-1, keepdims=True)
    return (x - mu) * jax.lax.rsqrt(var + eps) * g + b


def encoder_layer_ref(x, p):
    D = x.shape[-1]
    q = x @ p["wq"]
    k = x @ p["wk"]
    v = x @ p["wv"]
    s = jnp.einsum("bqd,bkd->bqk", q, k) / math.sqrt(D)
    a = jax.nn.softmax(s, axis=-1)
    new_x = jnp.einsum("bqk,bkd->bqd", a, v) @ p["wo"]
    xn = _layer_norm_ref(x + new_x, p["g1"], p["be1"])
    y = jax.nn.relu(xn @ p["w1"] + p["b1"])
    y = y @ p["w2"] + p["b2"]
    return _layer_norm_ref(xn + y, p["g2"], p["be2"])


if __name__ == "__main__":
    B, L, D = 2, 8, 32
    d_ff = 4 * D  # 128

    key = jax.random.PRNGKey(0)
    kx, kp = jax.random.split(key)
    x = jax.random.normal(kx, (B, L, D), jnp.float32)
    params = init_params(kp, D, d_ff)

    prepared = prepare_params(params)            # one-time weight prep (hoisted)
    out = jax.block_until_ready(encoder_layer(x, prepared))
    assert out.shape == (B, L, D) and out.dtype == jnp.float32

    ref = encoder_layer_ref(x, params)
    err = float(jnp.max(jnp.abs(out - ref)))
    assert err < 0.1, f"max abs err vs f32 reference too large: {err}"
    print("KERNEL_OK")
</pallas_src>

<mosaic_0001>
module attributes {stable_mosaic.version = 11 : i64} {
  func.func @encoder_layer_kernel(%arg0: i32, %arg1: memref<2x8x128xf32, #tpu.memory_space<vmem>>, %arg2: memref<128x384xbf16, #tpu.memory_space<vmem>>, %arg3: memref<128x128xbf16, #tpu.memory_space<vmem>>, %arg4: memref<128x128xbf16, #tpu.memory_space<vmem>>, %arg5: memref<1x128xf32, #tpu.memory_space<vmem>>, %arg6: memref<128x128xbf16, #tpu.memory_space<vmem>>, %arg7: memref<1x128xf32, #tpu.memory_space<vmem>>, %arg8: memref<4x128xf32, #tpu.memory_space<vmem>>, %arg9: memref<2x8x128xf32, #tpu.memory_space<vmem>>) attributes {dimension_semantics = [#tpu.dimension_semantics<parallel>], iteration_bounds = array<i64: 1>, scalar_prefetch = 0 : i64, scratch_operands = 0 : i64, tpu.core_type = #tpu.core_type<tc>, window_params = [{transform_indices = @transform_0, window_bounds = array<i64: 2, 8, 128>}, {pipeline_mode = #tpu.pipeline_mode<synchronous>, transform_indices = @transform_1, window_bounds = array<i64: 128, 384>}, {pipeline_mode = #tpu.pipeline_mode<synchronous>, transform_indices = @transform_2, window_bounds = array<i64: 128, 128>}, {pipeline_mode = #tpu.pipeline_mode<synchronous>, transform_indices = @transform_3, window_bounds = array<i64: 128, 128>}, {pipeline_mode = #tpu.pipeline_mode<synchronous>, transform_indices = @transform_4, window_bounds = array<i64: 1, 128>}, {pipeline_mode = #tpu.pipeline_mode<synchronous>, transform_indices = @transform_5, window_bounds = array<i64: 128, 128>}, {pipeline_mode = #tpu.pipeline_mode<synchronous>, transform_indices = @transform_6, window_bounds = array<i64: 1, 128>}, {pipeline_mode = #tpu.pipeline_mode<synchronous>, transform_indices = @transform_7, window_bounds = array<i64: 4, 128>}, {transform_indices = @transform_8, window_bounds = array<i64: 2, 8, 128>}]} {
    %c0 = arith.constant 0 : index
    %c0_0 = arith.constant 0 : index
    %c0_1 = arith.constant 0 : index
    %0 = vector.load %arg1[%c0, %c0_0, %c0_1] : memref<2x8x128xf32, #tpu.memory_space<vmem>>, vector<2x8x128xf32>
    %1 = vector.shape_cast %0 : vector<2x8x128xf32> to vector<16x128xf32>
    %2 = arith.truncf %1 : vector<16x128xf32> to vector<16x128xbf16>
    %c0_2 = arith.constant 0 : index
    %c0_3 = arith.constant 0 : index
    %3 = vector.load %arg2[%c0_2, %c0_3] : memref<128x384xbf16, #tpu.memory_space<vmem>>, vector<128x384xbf16>
    %cst = arith.constant dense<0.000000e+00> : vector<16x384xf32>
    %4 = tpu.matmul %2, %3, %cst {dimension_numbers = #tpu.dot_dimension_numbers<[1], [0], [0], [1], [0, 0, 1, 1], [], []>} : vector<16x128xbf16>, vector<128x384xbf16>, vector<16x384xf32> -> vector<16x384xf32>
    %5 = arith.truncf %4 : vector<16x384xf32> to vector<16x384xbf16>
    %6 = vector.extract_strided_slice %5 {offsets = [0, 0], sizes = [16, 128], strides = [1, 1]} : vector<16x384xbf16> to vector<16x128xbf16>
    %7 = vector.shape_cast %6 : vector<16x128xbf16> to vector<2x8x128xbf16>
    %8 = vector.extract_strided_slice %5 {offsets = [0, 128], sizes = [16, 128], strides = [1, 1]} : vector<16x384xbf16> to vector<16x128xbf16>
    %9 = vector.shape_cast %8 : vector<16x128xbf16> to vector<2x8x128xbf16>
    %10 = vector.extract_strided_slice %5 {offsets = [0, 256], sizes = [16, 128], strides = [1, 1]} : vector<16x384xbf16> to vector<16x128xbf16>
    %11 = vector.shape_cast %10 : vector<16x128xbf16> to vector<2x8x128xbf16>
    "tpu.trace_start"() <{level = 10 : i32, message = "bqd,bkd->bqk"}> : () -> ()
    %cst_4 = arith.constant dense<0.000000e+00> : vector<2x8x8xf32>
    %12 = tpu.matmul %7, %9, %cst_4 {dimension_numbers = #tpu.dot_dimension_numbers<[2], [2], [1], [1], [0, 0, 0, 1, 1, 1], [0], [0]>} : vector<2x8x128xbf16>, vector<2x8x128xbf16>, vector<2x8x8xf32> -> vector<2x8x8xf32>
    "tpu.trace_stop"() : () -> ()
    %cst_5 = arith.constant dense<0xFF800000> : vector<2x8xf32>
    %13 = vector.multi_reduction <maximumf>, %12, %cst_5 [2] : vector<2x8x8xf32> to vector<2x8xf32>
    %14 = vector.shape_cast %13 : vector<2x8xf32> to vector<2x8x1xf32>
    %15 = vector.broadcast %14 : vector<2x8x1xf32> to vector<2x8x8xf32>
    %16 = arith.subf %12, %15 : vector<2x8x8xf32>
    %17 = math.exp %16 : vector<2x8x8xf32>
    %cst_6 = arith.constant dense<0.000000e+00> : vector<2x8xf32>
    %18 = vector.multi_reduction <add>, %17, %cst_6 [2] : vector<2x8x8xf32> to vector<2x8xf32>
    %19 = vector.shape_cast %18 : vector<2x8xf32> to vector<2x8x1xf32>
    %20 = tpu.reciprocal %19 {approx = true} : vector<2x8x1xf32> -> vector<2x8x1xf32>
    %21 = vector.broadcast %20 : vector<2x8x1xf32> to vector<2x8x8xf32>
    %22 = arith.mulf %17, %21 : vector<2x8x8xf32>
    %23 = arith.truncf %22 : vector<2x8x8xf32> to vector<2x8x8xbf16>
    "tpu.trace_start"() <{level = 10 : i32, message = "bqk,bkd->bqd"}> : () -> ()
    %cst_7 = arith.constant dense<0.000000e+00> : vector<2x8x128xf32>
    %24 = tpu.matmul %23, %11, %cst_7 {dimension_numbers = #tpu.dot_dimension_numbers<[2], [1], [1], [2], [0, 0, 0, 1, 1, 2], [0], [0]>} : vector<2x8x8xbf16>, vector<2x8x128xbf16>, vector<2x8x128xf32> -> vector<2x8x128xf32>
    "tpu.trace_stop"() : () -> ()
    %25 = vector.shape_cast %24 : vector<2x8x128xf32> to vector<16x128xf32>
    %26 = arith.truncf %25 : vector<16x128xf32> to vector<16x128xbf16>
    %c0_8 = arith.constant 0 : index
    %c0_9 = arith.constant 0 : index
    %27 = vector.load %arg3[%c0_8, %c0_9] : memref<128x128xbf16, #tpu.memory_space<vmem>>, vector<128x128xbf16>
    %cst_10 = arith.constant dense<0.000000e+00> : vector<16x128xf32>
    %28 = tpu.matmul %26, %27, %cst_10 {dimension_numbers = #tpu.dot_dimension_numbers<[1], [0], [0], [1], [0, 0, 1, 1], [], []>} : vector<16x128xbf16>, vector<128x128xbf16>, vector<16x128xf32> -> vector<16x128xf32>
    %29 = arith.addf %1, %28 : vector<16x128xf32>
    %c0_11 = arith.constant 0 : index
    %c0_12 = arith.constant 0 : index
    %30 = vector.load %arg8[%c0_11, %c0_12] : memref<4x128xf32, #tpu.memory_space<vmem>>, vector<1x128xf32>
    %c1 = arith.constant 1 : index
    %c0_13 = arith.constant 0 : index
    %31 = vector.load %arg8[%c1, %c0_13] : memref<4x128xf32, #tpu.memory_space<vmem>>, vector<1x128xf32>
    %cst_14 = arith.constant dense<0.000000e+00> : vector<16xf32>
    %32 = vector.multi_reduction <add>, %29, %cst_14 [1] : vector<16x128xf32> to vector<16xf32>
    %33 = vector.shape_cast %32 : vector<16xf32> to vector<16x1xf32>
    %cst_15 = arith.constant 3.125000e-02 : f32
    %34 = vector.broadcast %cst_15 : f32 to vector<16x1xf32>
    %35 = arith.mulf %33, %34 : vector<16x1xf32>
    %36 = arith.mulf %29, %29 : vector<16x128xf32>
    %cst_16 = arith.constant dense<0.000000e+00> : vector<16xf32>
    %37 = vector.multi_reduction <add>, %36, %cst_16 [1] : vector<16x128xf32> to vector<16xf32>
    %38 = vector.shape_cast %37 : vector<16xf32> to vector<16x1xf32>
    %cst_17 = arith.constant 3.125000e-02 : f32
    %39 = vector.broadcast %cst_17 : f32 to vector<16x1xf32>
    %40 = arith.mulf %38, %39 : vector<16x1xf32>
    %41 = arith.mulf %35, %35 : vector<16x1xf32>
    %42 = arith.subf %40, %41 : vector<16x1xf32>
    %cst_18 = arith.constant 0.000000e+00 : f32
    %43 = vector.broadcast %cst_18 : f32 to vector<16x1xf32>
    %44 = arith.maximumf %42, %43 : vector<16x1xf32>
    %45 = vector.broadcast %35 : vector<16x1xf32> to vector<16x128xf32>
    %46 = arith.subf %29, %45 : vector<16x128xf32>
    %cst_19 = arith.constant 9.99999974E-6 : f32
    %47 = vector.broadcast %cst_19 : f32 to vector<16x1xf32>
    %48 = arith.addf %44, %47 : vector<16x1xf32>
    %49 = math.rsqrt %48 : vector<16x1xf32>
    %50 = vector.broadcast %49 : vector<16x1xf32> to vector<16x128xf32>
    %51 = arith.mulf %46, %50 : vector<16x128xf32>
    %52 = vector.broadcast %30 : vector<1x128xf32> to vector<16x128xf32>
    %53 = arith.mulf %51, %52 : vector<16x128xf32>
    %54 = vector.broadcast %31 : vector<1x128xf32> to vector<16x128xf32>
    %55 = arith.addf %53, %54 : vector<16x128xf32>
    %56 = arith.truncf %55 : vector<16x128xf32> to vector<16x128xbf16>
    %c0_20 = arith.constant 0 : index
    %c0_21 = arith.constant 0 : index
    %57 = vector.load %arg4[%c0_20, %c0_21] : memref<128x128xbf16, #tpu.memory_space<vmem>>, vector<128x128xbf16>
    %cst_22 = arith.constant dense<0.000000e+00> : vector<16x128xf32>
    %58 = tpu.matmul %56, %57, %cst_22 {dimension_numbers = #tpu.dot_dimension_numbers<[1], [0], [0], [1], [0, 0, 1, 1], [], []>} : vector<16x128xbf16>, vector<128x128xbf16>, vector<16x128xf32> -> vector<16x128xf32>
    %c0_23 = arith.constant 0 : index
    %c0_24 = arith.constant 0 : index
    %59 = vector.load %arg5[%c0_23, %c0_24] : memref<1x128xf32, #tpu.memory_space<vmem>>, vector<1x128xf32>
    %60 = vector.broadcast %59 : vector<1x128xf32> to vector<16x128xf32>
    %61 = arith.addf %58, %60 : vector<16x128xf32>
    %cst_25 = arith.constant 0.000000e+00 : f32
    %62 = vector.broadcast %cst_25 : f32 to vector<16x128xf32>
    %63 = arith.maximumf %61, %62 : vector<16x128xf32>
    %64 = arith.truncf %63 : vector<16x128xf32> to vector<16x128xbf16>
    %c0_26 = arith.constant 0 : index
    %c0_27 = arith.constant 0 : index
    %65 = vector.load %arg6[%c0_26, %c0_27] : memref<128x128xbf16, #tpu.memory_space<vmem>>, vector<128x128xbf16>
    %cst_28 = arith.constant dense<0.000000e+00> : vector<16x128xf32>
    %66 = tpu.matmul %64, %65, %cst_28 {dimension_numbers = #tpu.dot_dimension_numbers<[1], [0], [0], [1], [0, 0, 1, 1], [], []>} : vector<16x128xbf16>, vector<128x128xbf16>, vector<16x128xf32> -> vector<16x128xf32>
    %c0_29 = arith.constant 0 : index
    %c0_30 = arith.constant 0 : index
    %67 = vector.load %arg7[%c0_29, %c0_30] : memref<1x128xf32, #tpu.memory_space<vmem>>, vector<1x128xf32>
    %68 = vector.broadcast %67 : vector<1x128xf32> to vector<16x128xf32>
    %69 = arith.addf %66, %68 : vector<16x128xf32>
    %70 = arith.addf %55, %69 : vector<16x128xf32>
    %c2 = arith.constant 2 : index
    %c0_31 = arith.constant 0 : index
    %71 = vector.load %arg8[%c2, %c0_31] : memref<4x128xf32, #tpu.memory_space<vmem>>, vector<1x128xf32>
    %c3 = arith.constant 3 : index
    %c0_32 = arith.constant 0 : index
    %72 = vector.load %arg8[%c3, %c0_32] : memref<4x128xf32, #tpu.memory_space<vmem>>, vector<1x128xf32>
    %cst_33 = arith.constant dense<0.000000e+00> : vector<16xf32>
    %73 = vector.multi_reduction <add>, %70, %cst_33 [1] : vector<16x128xf32> to vector<16xf32>
    %74 = vector.shape_cast %73 : vector<16xf32> to vector<16x1xf32>
    %cst_34 = arith.constant 3.125000e-02 : f32
    %75 = vector.broadcast %cst_34 : f32 to vector<16x1xf32>
    %76 = arith.mulf %74, %75 : vector<16x1xf32>
    %77 = arith.mulf %70, %70 : vector<16x128xf32>
    %cst_35 = arith.constant dense<0.000000e+00> : vector<16xf32>
    %78 = vector.multi_reduction <add>, %77, %cst_35 [1] : vector<16x128xf32> to vector<16xf32>
    %79 = vector.shape_cast %78 : vector<16xf32> to vector<16x1xf32>
    %cst_36 = arith.constant 3.125000e-02 : f32
    %80 = vector.broadcast %cst_36 : f32 to vector<16x1xf32>
    %81 = arith.mulf %79, %80 : vector<16x1xf32>
    %82 = arith.mulf %76, %76 : vector<16x1xf32>
    %83 = arith.subf %81, %82 : vector<16x1xf32>
    %cst_37 = arith.constant 0.000000e+00 : f32
    %84 = vector.broadcast %cst_37 : f32 to vector<16x1xf32>
    %85 = arith.maximumf %83, %84 : vector<16x1xf32>
    %86 = vector.broadcast %76 : vector<16x1xf32> to vector<16x128xf32>
    %87 = arith.subf %70, %86 : vector<16x128xf32>
    %cst_38 = arith.constant 9.99999974E-6 : f32
    %88 = vector.broadcast %cst_38 : f32 to vector<16x1xf32>
    %89 = arith.addf %85, %88 : vector<16x1xf32>
    %90 = math.rsqrt %89 : vector<16x1xf32>
    %91 = vector.broadcast %90 : vector<16x1xf32> to vector<16x128xf32>
    %92 = arith.mulf %87, %91 : vector<16x128xf32>
    %93 = vector.broadcast %71 : vector<1x128xf32> to vector<16x128xf32>
    %94 = arith.mulf %92, %93 : vector<16x128xf32>
    %95 = vector.broadcast %72 : vector<1x128xf32> to vector<16x128xf32>
    %96 = arith.addf %94, %95 : vector<16x128xf32>
    %97 = vector.shape_cast %96 : vector<16x128xf32> to vector<2x8x128xf32>
    %c0_39 = arith.constant 0 : index
    %c0_40 = arith.constant 0 : index
    %c0_41 = arith.constant 0 : index
    %98 = vector.load %arg9[%c0_39, %c0_40, %c0_41] : memref<2x8x128xf32, #tpu.memory_space<vmem>>, vector<2x8x128xf32>
    tpu.vector_store %arg9[%c0_39, %c0_40, %c0_41], %97 {strides = array<i32>} : memref<2x8x128xf32, #tpu.memory_space<vmem>>, vector<2x8x128xf32>,
    return
  }
  func.func @transform_0(%arg0: i32) -> (i32, i32, i32) {
    %c0_i32 = arith.constant 0 : i32
    %c0_i32_0 = arith.constant 0 : i32
    %c0_i32_1 = arith.constant 0 : i32
    return %arg0, %c0_i32, %c0_i32_0 : i32, i32, i32
  }
  func.func @transform_1(%arg0: i32) -> (i32, i32) {
    %c0_i32 = arith.constant 0 : i32
    %c0_i32_0 = arith.constant 0 : i32
    %c0_i32_1 = arith.constant 0 : i32
    return %c0_i32, %c0_i32_0 : i32, i32
  }
  func.func @transform_2(%arg0: i32) -> (i32, i32) {
    %c0_i32 = arith.constant 0 : i32
    %c0_i32_0 = arith.constant 0 : i32
    %c0_i32_1 = arith.constant 0 : i32
    return %c0_i32, %c0_i32_0 : i32, i32
  }
  func.func @transform_3(%arg0: i32) -> (i32, i32) {
    %c0_i32 = arith.constant 0 : i32
    %c0_i32_0 = arith.constant 0 : i32
    %c0_i32_1 = arith.constant 0 : i32
    return %c0_i32, %c0_i32_0 : i32, i32
  }
  func.func @transform_4(%arg0: i32) -> (i32, i32) {
    %c0_i32 = arith.constant 0 : i32
    %c0_i32_0 = arith.constant 0 : i32
    %c0_i32_1 = arith.constant 0 : i32
    return %c0_i32, %c0_i32_0 : i32, i32
  }
  func.func @transform_5(%arg0: i32) -> (i32, i32) {
    %c0_i32 = arith.constant 0 : i32
    %c0_i32_0 = arith.constant 0 : i32
    %c0_i32_1 = arith.constant 0 : i32
    return %c0_i32, %c0_i32_0 : i32, i32
  }
  func.func @transform_6(%arg0: i32) -> (i32, i32) {
    %c0_i32 = arith.constant 0 : i32
    %c0_i32_0 = arith.constant 0 : i32
    %c0_i32_1 = arith.constant 0 : i32
    return %c0_i32, %c0_i32_0 : i32, i32
  }
  func.func @transform_7(%arg0: i32) -> (i32, i32) {
    %c0_i32 = arith.constant 0 : i32
    %c0_i32_0 = arith.constant 0 : i32
    %c0_i32_1 = arith.constant 0 : i32
    return %c0_i32, %c0_i32_0 : i32, i32
  }
  func.func @transform_8(%arg0: i32) -> (i32, i32, i32) {
    %c0_i32 = arith.constant 0 : i32
    %c0_i32_0 = arith.constant 0 : i32
    %c0_i32_1 = arith.constant 0 : i32
    return %arg0, %c0_i32, %c0_i32_0 : i32, i32, i32
  }
}

</mosaic_0001>

<bundles_post_ra>
// kernel: _encoder_layer_impl.1
= control target key start
LH: loop header
LB: loop body
LE: loop exit
PB: predicated region body
PF: predicated region fallthrough
CT: control target
= control target key end

     0   :  { %13 = vsyncpa [#allocation3], 0  ;;  %s1826_s0 = inlined_call_operand.hbm [shape: f32[2,8,128], index: 0, kind: input, shape index: {}]   ;;  %s1827_s1 = inlined_call_operand.hbm [shape: bf16[128,384], index: 1, kind: input, shape index: {}]   ;;  %s1828_s2 = inlined_call_operand.hbm [shape: bf16[128,128], index: 2, kind: input, shape index: {}]   ;;  %s1829_s3 = inlined_call_operand.hbm [shape: bf16[128,128], index: 3, kind: input, shape index: {}]   ;;  %s1830_s4 = inlined_call_operand.hbm [shape: f32[1,128], index: 4, kind: input, shape index: {}]   ;;  %s1831_s5 = inlined_call_operand.hbm [shape: bf16[128,128], index: 5, kind: input, shape index: {}]   ;;  %s1832_s6 = inlined_call_operand.hbm [shape: f32[1,128], index: 6, kind: input, shape index: {}]   ;;  %s1833_s7 = inlined_call_operand.hbm [shape: f32[4,128], index: 7, kind: input, shape index: {}]   ;;  %s1834_s8 = inlined_call_operand.hbm [shape: f32[2,8,128], index: 8, kind: output, shape index: {}]  }
   0x1   :  { %14 = vsyncpa [#allocation6], 0 }
   0x2   :  { %15 = vsyncpa [#allocation9], 0 }
   0x3   :  { %16 = vsyncpa [#allocation12], 0 }
   0x4   :  { %17 = vsyncpa [#allocation15], 0 }
   0x5   :  { %18 = vsyncpa [#allocation4], 0  ;;  %s1562_s27 = smov [#allocation5]   ;;  %s1352_s9 = scalar_lea.hbm %s1827_s1, 3072 }
   0x6   :  { %s36_s28 = sshll.u32 %s1562_s27, 4  ;;  %p1353_p0 = scmp.ne.s32.totalorder %s1827_s1, %s1352_s9  ;;  %s37_s28 = int_to_ptr.vmem [resolvable:$true] %s36_s28 }
   0x7   :  { %p1356_p1 = scmp.lt.u32.totalorder %s1352_s9, %s1827_s1 }
   0x9   :  { %p1358_p2 = pnand %p1356_p1, %p1353_p0 }
   0xb   :  { %1361 = shalt.err (!%p1358_p2)
}
   0xc   :  { %s1362_s14 = scalar_lea.vmem %s37_s28, 3072  ;;  %p1367_p4 = scmp.lt.s32.totalorder %s37_s28, %s37_s28 }
   0xd   :  { %p1363_p3 = scmp.ne.s32.totalorder %s37_s28, %s1362_s14  ;;  %p1368_p5 = scmp.lt.s32.totalorder %s1362_s14, %s1362_s14 }
   0xf   :  { %p1369_p6 = por %p1368_p5, %p1367_p4 }
  0x11   :  { %p1370_p7 = pnand %p1369_p6, %p1363_p3 }
  0x13   :  { %1373 = shalt.err (!%p1370_p7)
}
  0x14   :  { %s1563_s15 = smov 192   ;;  %s1564_s16 = smov 12  }
  0x15   :  { %42 = dma.hbm_to_vmem [thread:$0]  %s1827_s1, 3072, %s37_s28, [#allocation6], %s1563_s15, %s1563_s15, %s1564_s16  }
  0x16   :  { %s1565_s19 = smov [#allocation8]   ;;  %s1566_s21 = smov [#allocation11]  }
  0x17   :  { %s60_s20 = sshll.u32 %s1565_s19, 4  ;;  %s82_s22 = sshll.u32 %s1566_s21, 4  ;;  %s61_s20 = int_to_ptr.vmem [resolvable:$true] %s60_s20  ;;  %s83_s22 = int_to_ptr.vmem [resolvable:$true] %s82_s22 }
  0x18   :  { %s1374_s25 = scalar_lea.hbm %s1829_s3, 1024 }
  0x19   :  { %p1375_p8 = scmp.ne.s32.totalorder %s1829_s3, %s1374_s25  ;;  %p1378_p9 = scmp.lt.u32.totalorder %s1374_s25, %s1829_s3 }
  0x1b   :  { %p1380_p10 = pnand %p1378_p9, %p1375_p8 }
  0x1d   :  { %1383 = shalt.err (!%p1380_p10)
}
  0x1e   :  { %s1384_s1 = scalar_lea.vmem %s61_s20, 1024  ;;  %p1389_p12 = scmp.lt.s32.totalorder %s61_s20, %s61_s20 }
  0x1f   :  { %p1385_p11 = scmp.ne.s32.totalorder %s61_s20, %s1384_s1  ;;  %p1390_p13 = scmp.lt.s32.totalorder %s1384_s1, %s1384_s1 }
  0x21   :  { %p1391_p0 = por %p1390_p13, %p1389_p12 }
  0x23   :  { %p1392_p1 = pnand %p1391_p0, %p1385_p11 }
  0x25   :  { %1395 = shalt.err (!%p1392_p1)
}
  0x26   :  { %s1567_s28 = smov 64   ;;  %s1568_s9 = smov 4  }
  0x27   :  { %66 = dma.hbm_to_vmem [thread:$0]  %s1829_s3, 1024, %s61_s20, [#allocation9], %s1567_s28, %s1567_s28, %s1568_s9  }
  0x28   :  { %s1396_s14 = scalar_lea.hbm %s1831_s5, 1024 }
  0x29   :  { %p1397_p2 = scmp.ne.s32.totalorder %s1831_s5, %s1396_s14  ;;  %p1400_p3 = scmp.lt.u32.totalorder %s1396_s14, %s1831_s5 }
  0x2b   :  { %p1402_p4 = pnand %p1400_p3, %p1397_p2 }
  0x2d   :  { %1405 = shalt.err (!%p1402_p4)
}
  0x2e   :  { %s1406_s19 = scalar_lea.vmem %s83_s22, 1024  ;;  %p1411_p6 = scmp.lt.s32.totalorder %s83_s22, %s83_s22 }
  0x2f   :  { %p1407_p5 = scmp.ne.s32.totalorder %s83_s22, %s1406_s19  ;;  %p1412_p7 = scmp.lt.s32.totalorder %s1406_s19, %s1406_s19 }
  0x31   :  { %p1413_p8 = por %p1412_p7, %p1411_p6 }
  0x33   :  { %p1414_p9 = pnand %p1413_p8, %p1407_p5 }
  0x35   :  { %1417 = shalt.err (!%p1414_p9)
}
  0x36   :  { %88 = dma.hbm_to_vmem [thread:$0]  %s1831_s5, 1024, %s83_s22, [#allocation12], %s1567_s28, %s1567_s28, %s1568_s9  }
  0x37   :  { %s1569_s21 = smov [#allocation2]   ;;  %s1418_s26 = scalar_lea.hbm %s1826_s0, 256 }
  0x38   :  { %s24_s23 = sshll.u32 %s1569_s21, 4  ;;  %p1419_p10 = scmp.ne.s32.totalorder %s1826_s0, %s1418_s26  ;;  %s25_s23 = int_to_ptr.vmem [resolvable:$true] %s24_s23 }
  0x39   :  { %p1422_p11 = scmp.lt.u32.totalorder %s1418_s26, %s1826_s0 }
  0x3b   :  { %p1424_p12 = pnand %p1422_p11, %p1419_p10 }
  0x3d   :  { %1427 = shalt.err (!%p1424_p12)
}
  0x3e   :  { %s1428_s10 = scalar_lea.vmem %s25_s23, 256  ;;  %p1433_p0 = scmp.lt.s32.totalorder %s25_s23, %s25_s23 }
  0x3f   :  { %p1429_p13 = scmp.ne.s32.totalorder %s25_s23, %s1428_s10  ;;  %p1434_p1 = scmp.lt.s32.totalorder %s1428_s10, %s1428_s10 }
  0x41   :  { %p1435_p2 = por %p1434_p1, %p1433_p0 }
  0x43   :  { %p1436_p3 = pnand %p1435_p2, %p1429_p13 }
  0x45   :  { %1439 = shalt.err (!%p1436_p3)
}
  0x46   :  { %s1570_s5 = smov 128   ;;  %s1571_s22 = smov 8  }
  0x47   :  { %30 = dma.hbm_to_vmem [thread:$0]  %s1826_s0, 256, %s25_s23, [#allocation3], %s1570_s5, %s1570_s5, %s1571_s22  }
  0x48   :  { %s1572_s13 = smov [#allocation7]   ;;  %s1573_s15 = smov [#allocation10]  }
  0x49   :  { %s48_s14 = sshll.u32 %s1572_s13, 4  ;;  %s73_s16 = sshll.u32 %s1573_s15, 4  ;;  %s49_s14 = int_to_ptr.vmem [resolvable:$true] %s48_s14  ;;  %s74_s16 = int_to_ptr.vmem [resolvable:$true] %s73_s16 }
  0x4a   :  { %s1440_s19 = scalar_lea.hbm %s1828_s2, 1024 }
  0x4b   :  { %p1441_p4 = scmp.ne.s32.totalorder %s1828_s2, %s1440_s19  ;;  %p1444_p5 = scmp.lt.u32.totalorder %s1440_s19, %s1828_s2 }
  0x4d   :  { %p1446_p6 = pnand %p1444_p5, %p1441_p4 }
  0x4f   :  { %1449 = shalt.err (!%p1446_p6)
}
  0x50   :  { %s1450_s0 = scalar_lea.vmem %s49_s14, 1024  ;;  %p1455_p8 = scmp.lt.s32.totalorder %s49_s14, %s49_s14 }
  0x51   :  { %p1451_p7 = scmp.ne.s32.totalorder %s49_s14, %s1450_s0  ;;  %p1456_p9 = scmp.lt.s32.totalorder %s1450_s0, %s1450_s0 }
  0x53   :  { %p1457_p10 = por %p1456_p9, %p1455_p8 }
  0x55   :  { %p1458_p11 = pnand %p1457_p10, %p1451_p7 }
  0x57   :  { %1461 = shalt.err (!%p1458_p11)
}
  0x58   :  { %54 = dma.hbm_to_vmem [thread:$0]  %s1828_s2, 1024, %s49_s14, [#allocation6], %s1567_s28, %s1567_s28, %s1568_s9  }
  0x59   :  { %s1462_s29 = scalar_lea.hbm %s1830_s4, 16 }
  0x5a   :  { %p1463_p12 = scmp.ne.s32.totalorder %s1830_s4, %s1462_s29  ;;  %p1466_p13 = scmp.lt.u32.totalorder %s1462_s29, %s1830_s4 }
  0x5c   :  { %p1468_p0 = pnand %p1466_p13, %p1463_p12 }
  0x5e   :  { %1471 = shalt.err (!%p1468_p0)
}
  0x5f   :  { %s1472_s12 = scalar_lea.vmem %s74_s16, 16  ;;  %s1476_s13 = scalar_lea.vmem %s74_s16, 32 }
  0x60   :  { %p1473_p1 = scmp.ne.s32.totalorder %s74_s16, %s1472_s12  ;;  %p1477_p2 = scmp.lt.s32.totalorder %s74_s16, %s74_s16 }
  0x61   :  { %p1478_p3 = scmp.lt.s32.totalorder %s1476_s13, %s1472_s12 }
  0x63   :  { %p1479_p4 = por %p1478_p3, %p1477_p2 }
  0x65   :  { %p1480_p5 = pnand %p1479_p4, %p1473_p1 }
  0x67   :  { %1483 = shalt.err (!%p1480_p5)
}
  0x68   :  { %76 = dma.hbm_to_vmem [thread:$0]  %s1830_s4, 16, %s74_s16, [#allocation9]  }
  0x69   :  { %s1574_s9 = smov [#allocation13]   ;;  %s1575_s15 = smov [#allocation14]  }
  0x6a   :  { %s95_s14 = sshll.u32 %s1574_s9, 4  ;;  %s105_s17 = sshll.u32 %s1575_s15, 4  ;;  %s96_s14 = int_to_ptr.vmem [resolvable:$true] %s95_s14  ;;  %s106_s17 = int_to_ptr.vmem [resolvable:$true] %s105_s17 }
  0x6b   :  { %s1484_s3 = scalar_lea.hbm %s1832_s6, 16 }
  0x6c   :  { %p1485_p6 = scmp.ne.s32.totalorder %s1832_s6, %s1484_s3  ;;  %p1488_p7 = scmp.lt.u32.totalorder %s1484_s3, %s1832_s6 }
  0x6e   :  { %p1490_p8 = pnand %p1488_p7, %p1485_p6 }
  0x70   :  { %1493 = shalt.err (!%p1490_p8)
}
  0x71   :  { %s1494_s4 = scalar_lea.vmem %s96_s14, 16  ;;  %s1498_s16 = scalar_lea.vmem %s96_s14, 32 }
  0x72   :  { %p1495_p9 = scmp.ne.s32.totalorder %s96_s14, %s1494_s4  ;;  %p1499_p10 = scmp.lt.s32.totalorder %s96_s14, %s96_s14 }
  0x73   :  { %p1500_p11 = scmp.lt.s32.totalorder %s1498_s16, %s1494_s4 }
  0x75   :  { %p1501_p12 = por %p1500_p11, %p1499_p10 }
  0x77   :  { %p1502_p13 = pnand %p1501_p12, %p1495_p9 }
  0x79   :  { %1505 = shalt.err (!%p1502_p13)
}
  0x7a   :  { %98 = dma.hbm_to_vmem [thread:$0]  %s1832_s6, 16, %s96_s14, [#allocation12]  }
  0x7b   :  { %s1506_s29 = scalar_lea.hbm %s1833_s7, 64 }
  0x7c   :  { %p1507_p0 = scmp.ne.s32.totalorder %s1833_s7, %s1506_s29  ;;  %p1510_p1 = scmp.lt.u32.totalorder %s1506_s29, %s1833_s7 }
  0x7e   :  { %p1512_p2 = pnand %p1510_p1, %p1507_p0 }
  0x80   :  { %1515 = shalt.err (!%p1512_p2)
}
  0x81   :  { %s1516_s12 = scalar_lea.vmem %s106_s17, 64  ;;  %p1521_p4 = scmp.lt.s32.totalorder %s106_s17, %s106_s17 }
  0x82   :  { %p1517_p3 = scmp.ne.s32.totalorder %s106_s17, %s1516_s12  ;;  %p1522_p5 = scmp.lt.s32.totalorder %s1516_s12, %s1516_s12 }
  0x84   :  { %p1523_p6 = por %p1522_p5, %p1521_p4 }
  0x86   :  { %p1524_p7 = pnand %p1523_p6, %p1517_p3 }
  0x88   :  { %1527 = shalt.err (!%p1524_p7)
}
  0x89   :  { %108 = dma.hbm_to_vmem [thread:$0]  %s1833_s7, 64, %s106_s17, [#allocation15]  }
  0x8a   :  { %1550 = dma.done.wait [#allocation3], 256  }
  0x8b   :  { %1551 = vsyncadd [#allocation3], 4294967040 }
  0x8c   :  { %1552 = dma.done.wait [#allocation6], 4096  }
  0x8d   :  { %1553 = vsyncadd [#allocation6], 4294963200 }
  0x8e   :  { %1554 = dma.done.wait [#allocation9], 1040  }
  0x8f   :  { %1555 = vsyncadd [#allocation9], 4294966256 }
  0x90   :  { %1556 = dma.done.wait [#allocation12], 1040  }
  0x91   :  { %1557 = vsyncadd [#allocation12], 4294966256 }
  0x92   :  { %1558 = dma.done.wait [#allocation15], 64  }
  0x93   :  { %1559 = vsyncadd [#allocation15], 4294967232  ;;  %v1576_v0 = vmov 0   ;;  %v1577_v1 = vmov 0.0   ;;  %v1280_v2 = vld [vmem:[#allocation5 + $0x4] ss:$12 sps:$4 sm:$0xff]  }
  0x94   :  { %329 = vmatprep.mubr.bf16.mxu0 %v1576_v0  ;;  %1158 = vmatprep.subr.bf16.mxu1 %v1577_v1  ;;  %v1282_v3 = vld [vmem:[#allocation5] ss:$12 sps:$4 sm:$0xff]   ;;  %v1283_v4 = vld [vmem:[#allocation5 + $0x1c] ss:$12 sps:$4 sm:$0xff]   ;;  %v1285_v5 = vld [vmem:[#allocation5 + $0x18] ss:$12 sps:$4 sm:$0xff]  }
  0x95   :  { %297 = vmatprep.subr.bf16.mxu0 %v1280_v2  ;;  %v1286_v6 = vld [vmem:[#allocation5 + $0x34] ss:$12 sps:$4 sm:$0xff]   ;;  %v1288_v7 = vld [vmem:[#allocation5 + $0x30] ss:$12 sps:$4 sm:$0xff]   ;;  %v1289_v8 = vld [vmem:[#allocation5 + $0x4c] ss:$12 sps:$4 sm:$0xff]  }
  0x96   :  { %298 = vmatpush1.bf16.msra.mxu0 %v1282_v3  ;;  %v1291_v9 = vld [vmem:[#allocation5 + $0x48] ss:$12 sps:$4 sm:$0xff]   ;;  %v1292_v10 = vld [vmem:[#allocation5 + $0x64] ss:$12 sps:$4 sm:$0xff]   ;;  %v1305_v12 = vld [vmem:[#allocation5 + $0x20] ss:$12 sps:$4 sm:$0xff]  }
  0x97   :  { %299 = vmatprep.subr.bf16.mxu0 %v1283_v4  ;;  %v1304_v11 = vld [vmem:[#allocation5 + $0x8] ss:$12 sps:$4 sm:$0xff]   ;;  %v1294_v13 = vld [vmem:[#allocation5 + $0x60] ss:$12 sps:$4 sm:$0xff]   ;;  %v1297_v15 = vld [vmem:[#allocation5 + $0x78] ss:$12 sps:$4 sm:$0xff]  }
  0x98   :  { %1159 = vmatpush3.bf16.msra.mxu1 %v1304_v11  ;;  %v1295_v14 = vld [vmem:[#allocation5 + $0x7c] ss:$12 sps:$4 sm:$0xff]   ;;  %v1306_v16 = vld [vmem:[#allocation5 + $0x38] ss:$12 sps:$4 sm:$0xff]   ;;  %v1298_v17 = vld [vmem:[#allocation5 + $0x94] ss:$12 sps:$4 sm:$0xff]  }
  0x99   :  { %1160 = vmatprep.subr.bf16.mxu1 %v1577_v1  ;;  %v1307_v18 = vld [vmem:[#allocation5 + $0x50] ss:$12 sps:$4 sm:$0xff]   ;;  %v1301_v20 = vld [vmem:[#allocation5 + $0xac] ss:$12 sps:$4 sm:$0xff]   ;;  %v1308_v21 = vld [vmem:[#allocation5 + $0x68] ss:$12 sps:$4 sm:$0xff]  }
  0x9a   :  { %300 = vmatpush1.bf16.msra.mxu0 %v1285_v5  ;;  %v1300_v19 = vld [vmem:[#allocation5 + $0x90] ss:$12 sps:$4 sm:$0xff]   ;;  %v1303_v22 = vld [vmem:[#allocation5 + $0xa8] ss:$12 sps:$4 sm:$0xff]   ;;  %v1309_v25 = vld [vmem:[#allocation5 + $0x80] ss:$12 sps:$4 sm:$0xff]  }
  0x9b   :  { %301 = vmatprep.subr.bf16.mxu0 %v1286_v6  ;;  %v1737_v23 = vld [vmem:[#allocation2] sm:$0xff]  ;;  %v1739_v24 = vld [vmem:[#allocation2 + $0x8] sm:$0xff]  ;;  %vm1578_vm0 = vmmov 0   ;;  %vm511_vm1 = vcmask 1043456   ;;  %vm483_vm2 = vcmask 64512   ;;  %v1312_v2 = vld [vmem:[#allocation7] sm:$0xff]  }
  0x9c   :  { %1161 = vmatpush3.bf16.msra.mxu1 %v1305_v12  ;;  %v136_v26 = vpack.c.bf16 %v1739_v24, %v1737_v23  ;;  %v1310_v27 = vld [vmem:[#allocation5 + $0x98] ss:$12 sps:$4 sm:$0xff]   ;;  %v1311_v28 = vld [vmem:[#allocation5 + $0xb0] ss:$12 sps:$4 sm:$0xff]   ;;  %1174 = vmatprep.mubr.msk.bf16.mxu1 %vm1578_vm0, %v1577_v1  ;;  %v1313_v3 = vld [vmem:[#allocation7 + $0x8] sm:$0xff]   ;;  %s1579_s7 = smov [#allocation16]  }
  0x9d   :  { %1162 = vmatprep.subr.bf16.mxu1 %v1577_v1  ;;  %v1314_v4 = vld [vmem:[#allocation7 + $0x10] sm:$0xff]   ;;  %v1315_v5 = vld [vmem:[#allocation7 + $0x18] sm:$0xff]   ;;  %v1316_v6 = vld [vmem:[#allocation7 + $0x20] sm:$0xff]   ;;  %s1030_s2 = sshll.u32 %s1579_s7, 4  ;;  %s1031_s2 = int_to_ptr.vmem [resolvable:$true] %s1030_s2 }
  0x9e   :  { %302 = vmatpush1.bf16.msra.mxu0 %v1288_v7  ;;  %s1528_s28 = scalar_lea.vmem %s1031_s2, 256  ;;  %p1533_p9 = scmp.lt.s32.totalorder %s1031_s2, %s1031_s2 }
  0x9f   :  { %303 = vmatprep.subr.bf16.mxu0 %v1289_v8  ;;  %p1529_p8 = scmp.ne.s32.totalorder %s1031_s2, %s1528_s28  ;;  %p1534_p10 = scmp.lt.s32.totalorder %s1528_s28, %s1528_s28 }
  0xa0   :  { %1163 = vmatpush3.bf16.msra.mxu1 %v1306_v16  ;;  %v1318_v16 = vld [vmem:[#allocation7 + $0x30] sm:$0xff]  }
  0xa1   :  { %1164 = vmatprep.subr.bf16.mxu1 %v1577_v1  ;;  %p1535_p11 = por %p1534_p10, %p1533_p9 }
  0xa2   :  { %304 = vmatpush1.bf16.msra.mxu0 %v1291_v9 }
  0xa3   :  { %305 = vmatprep.subr.bf16.mxu0 %v1292_v10  ;;  %p1536_p12 = pnand %p1535_p11, %p1529_p8 }
  0xa4   :  { %1165 = vmatpush3.bf16.msra.mxu1 %v1307_v18 }
  0xa5   :  { %1166 = vmatprep.subr.bf16.mxu1 %v1577_v1 }
  0xa6   :  { %306 = vmatpush1.bf16.msra.mxu0 %v1294_v13 }
  0xa7   :  { %307 = vmatprep.subr.bf16.mxu0 %v1295_v14 }
  0xa8   :  { %1167 = vmatpush3.bf16.msra.mxu1 %v1308_v21 }
  0xa9   :  { %1168 = vmatprep.subr.bf16.mxu1 %v1577_v1 }
  0xaa   :  { %308 = vmatpush1.bf16.msra.mxu0 %v1297_v15  ;;  %v1317_v15 = vld [vmem:[#allocation7 + $0x28] sm:$0xff]  }
  0xab   :  { %309 = vmatprep.subr.bf16.mxu0 %v1298_v17  ;;  %v1319_v17 = vld [vmem:[#allocation7 + $0x38] sm:$0xff]  }
  0xac   :  { %1169 = vmatpush3.bf16.msra.mxu1 %v1309_v25 }
  0xad   :  { %1170 = vmatprep.subr.bf16.mxu1 %v1577_v1 }
  0xae   :  { %310 = vmatpush1.bf16.msra.mxu0 %v1300_v19 }
  0xaf   :  { %311 = vmatprep.subr.bf16.mxu0 %v1301_v20 }
  0xb0   :  { %1171 = vmatpush3.bf16.msra.mxu1 %v1310_v27 }
  0xb1   :  { %1172 = vmatprep.subr.bf16.mxu1 %v1577_v1 }
  0xb2   :  { %312 = vmatpush1.bf16.msra.mxu0 %v1303_v22 }
  0xb3   :  { %1202 = vmatprep.subr.bf16.mxu0 %v1577_v1 }
  0xb4   :  { %1173 = vmatpush3.bf16.msra.mxu1 %v1311_v28 }
  0xb5   :  { %330 = vmatmul.mubr.bf16.vlgmr.msra.gmra.mrb[0].mxu0 %v136_v26  ;;  %1178 = vmatprep.subr.bf16.mxu1 %v1577_v1 }
  0xb6   :  { %1218 = vmatprep.mubr.msk.bf16.mxu0 %vm1578_vm0, %v1577_v1  ;;  %1203 = vmatpush3.bf16.msra.mxu0 %v1312_v2 }
  0xb7   :  { %1175 = vmatmul.mubr.bf16.vlgmr.msra.gmra.mrb[0].mxu1 %v136_v26  ;;  %1204 = vmatprep.subr.bf16.mxu0 %v1577_v1 }
  0xb8   :  { %1180 = vmatprep.mubr.msk.bf16.mxu1 %vm1578_vm0, %v1577_v1 }
  0xba   :  { %1205 = vmatpush3.bf16.msra.mxu0 %v1313_v3 }
  0xbb   :  { %1206 = vmatprep.subr.bf16.mxu0 %v1577_v1 }
  0xbe   :  { %1207 = vmatpush3.bf16.msra.mxu0 %v1314_v4  ;;  %v1086_v4 = vld [vmem:[#allocation14] ss:$0 sm:$0xff] }
  0xbf   :  { %1208 = vmatprep.subr.bf16.mxu0 %v1577_v1 }
  0xc2   :  { %1209 = vmatpush3.bf16.msra.mxu0 %v1315_v5 }
  0xc3   :  { %1210 = vmatprep.subr.bf16.mxu0 %v1577_v1 }
  0xc6   :  { %1211 = vmatpush3.bf16.msra.mxu0 %v1316_v6 }
  0xc7   :  { %1212 = vmatprep.subr.bf16.mxu0 %v1577_v1 }
  0xca   :  { %1213 = vmatpush3.bf16.msra.mxu0 %v1317_v15  ;;  %v1334_v15 = vld [vmem:[#allocation11 + $0x30] sm:$0xff]  }
  0xcb   :  { %1214 = vmatprep.subr.bf16.mxu0 %v1577_v1 }
  0xce   :  { %1215 = vmatpush3.bf16.msra.mxu0 %v1318_v16  ;;  %v1335_v16 = vld [vmem:[#allocation11 + $0x38] sm:$0xff]  }
  0xcf   :  { %1216 = vmatprep.subr.bf16.mxu0 %v1577_v1 }
  0xd2   :  { %1217 = vmatpush3.bf16.msra.mxu0 %v1319_v17  ;;  %v1088_v17 = vld [vmem:[#allocation10] ss:$0 sm:$0xff] }
  0xd3   :  { %1242 = vmatprep.subr.bf16.mxu0 %v1577_v1 }
 0x188   :  { %v331_v29 = vpop.f32.mrb[0].mxu0 }
 0x189   :  { %v333_v30 = vpop.f32.mrb[1].mxu0  ;;  %v1108_v34 = vpack.c.bf16 %v331_v29, %v331_v29 }
 0x18a   :  { %v1110_v31 = vpack.c.bf16 %v333_v30, %v333_v30  ;;  %v335_v32 = vpop.f32.mrb[2].mxu0  ;;  %v374_v37 = vpop.f32.mrb[0].mxu1 }
 0x18b   :  { %v337_v33 = vpop.f32.mrb[3].mxu0  ;;  %v1109_v36 = vpack.c.bf16 %v335_v32, %v335_v32  ;;  %v1112_v38 = vpack.c.bf16 %v374_v37, %v374_v37  ;;  %v1176_v39 = vpop.f32.mrb[1].mxu1  ;;  %v1321_v37 = vld [vmem:[#allocation8 + $0x8] sm:$0xff]  }
 0x18c   :  { %1179 = vmatpush3.bf16.xpose.msra.mxu1 %v1110_v31  ;;  %v1111_v35 = vpack.c.bf16 %v337_v33, %v337_v33  ;;  %v377_v40 = vpop.f32.mrb[2].mxu1  ;;  %v1324_v39 = vld [vmem:[#allocation8 + $0x20] sm:$0xff]  }
 0x18d   :  { %1184 = vmatprep.subr.bf16.mxu1 %v1577_v1  ;;  %v513_v41 = vsel %vm511_vm1, %v1112_v38, 0  ;;  %v1113_v42 = vpack.c.bf16 %v377_v40, %v377_v40  ;;  %v1177_v43 = vpop.f32.mrb[3].mxu1  ;;  %v1323_v38 = vld [vmem:[#allocation8 + $0x18] sm:$0xff]   ;;  %v1325_v40 = vld [vmem:[#allocation8 + $0x28] sm:$0xff]  }
 0x18e   :  { %v1328_v43 = vld [vmem:[#allocation11] sm:$0xff]  }
 0x18f   :  { %v559_v44 = vsel %vm511_vm1, %v1113_v42, 0  ;;  %v1327_v42 = vld [vmem:[#allocation8 + $0x38] sm:$0xff]  }
 0x193   :  { %1181 = vmatmul.mubr.bf16.vlgmr.msra.gmra.mrb[4].mxu1 %v1108_v34 }
 0x194   :  { %1185 = vmatpush3.bf16.xpose.msra.mxu1 %v1111_v35  ;;  %1186 = vmatprep.mubr.msk.bf16.mxu1 %vm1578_vm0, %v1577_v1 }
 0x195   :  { %1190 = vmatprep.subr.bf16.mxu1 %v1577_v1 }
 0x19b   :  { %1187 = vmatmul.mubr.bf16.vlgmr.msra.gmra.mrb[8].mxu1 %v1109_v36 }
 0x19c   :  { %1192 = vmatprep.mubr.msk.bf16.mxu1 %vm1578_vm0, %v1577_v1  ;;  %1191 = vmatpush3.bf16.msra.mxu1 %v513_v41  ;;  %v1326_v41 = vld [vmem:[#allocation8 + $0x30] sm:$0xff]  }
 0x19d   :  { %1196 = vmatprep.subr.bf16.mxu1 %v1577_v1 }
 0x266   :  { %v437_v45 = vpop.f32.mrb[4].mxu1 }
 0x267   :  { %v1182_v46 = vpop.f32.mrb[5].mxu1  ;;  %v484_v47 = vsel %vm483_vm2, %v437_v45, -inf }
 0x268   :  { %485 = vmax.xlane.f32.xlu0 %v484_v47  ;;  %v440_v48 = vpop.f32.mrb[6].mxu1  ;;  %v1331_v46 = vld [vmem:[#allocation11 + $0x18] sm:$0xff]   ;;  %v1332_v47 = vld [vmem:[#allocation11 + $0x20] sm:$0xff]  }
 0x269   :  { %v1183_v49 = vpop.f32.mrb[7].mxu1  ;;  %v1333_v48 = vld [vmem:[#allocation11 + $0x28] sm:$0xff]  }
 0x26e   :  { %v477_v50 = vpop.f32.mrb[8].mxu1 }
 0x26f   :  { %v1188_v51 = vpop.f32.mrb[9].mxu1  ;;  %v487_v52 = vsel %vm483_vm2, %v477_v50, -inf }
 0x270   :  { %488 = vmax.xlane.f32.xlu0 %v487_v52  ;;  %v480_v53 = vpop.f32.mrb[10].mxu1 }
 0x271   :  { %v1189_v54 = vpop.f32.mrb[11].mxu1 }
 0x2f5   :  { %v486_v55 = vpop.xlane.xlu0 %485 }
 0x2f6   :  { %v490_v56 = vsub.f32 %v437_v45, %v486_v55  ;;  %v1330_v45 = vld [vmem:[#allocation11 + $0x10] sm:$0xff]  }
 0x2f8   :  { %v492_v57 = vmul.f32 1.442695, %v490_v56 }
 0x2fa   :  { %1336 = vpow2.f32 %v492_v57 }
 0x2fd   :  { %v489_v58 = vpop.xlane.xlu0 %488 }
 0x2fe   :  { %v491_v59 = vsub.f32 %v477_v50, %v489_v58 }
 0x300   :  { %v494_v60 = vmul.f32 1.442695, %v491_v59 }
 0x302   :  { %1338 = vpow2.f32 %v494_v60 }
 0x304   :  { %v1337_v61 = vpop.eup %1336 }
 0x305   :  { %v496_v62 = vsel %vm483_vm2, %v1337_v61, 0.0 }
 0x306   :  { %497 = vadd.xlane.f32.xlu1 %v496_v62 }
 0x30c   :  { %v1339_v63 = vpop.eup %1338 }
 0x30d   :  { %v499_v0 = vsel %vm483_vm2, %v1339_v63, 0.0 }
 0x30e   :  { %500 = vadd.xlane.f32.xlu1 %v499_v0 }
 0x393   :  { %v498_v7 = vpop.xlane.xlu1 %497 }
 0x394   :  { %1340 = vrcp.f32 %v498_v7 }
 0x39b   :  { %v501_v8 = vpop.xlane.xlu1 %500 }
 0x39c   :  { %1342 = vrcp.f32 %v501_v8 }
 0x39e   :  { %v1341_v9 = vpop.eup %1340 }
 0x39f   :  { %v504_v10 = vmul.f32 %v1341_v9, %v1337_v61 }
 0x3a1   :  { %v506_v11 = vpack.c.bf16 %v504_v10, %v504_v10  ;;  %v1087_v10 = vld [vmem:[#allocation14 + $0x1] ss:$0 sm:$0xff] }
 0x3a3   :  { %1193 = vmatmul.mubr.msk.bf16.vlgmr.msra.gmra.mrb[12].mxu1 %vm483_vm2, %v506_v11 }
 0x3a4   :  { %1197 = vmatpush3.bf16.msra.mxu1 %v559_v44  ;;  %1198 = vmatprep.mubr.msk.bf16.mxu1 %vm1578_vm0, %v1577_v1  ;;  %v1329_v44 = vld [vmem:[#allocation11 + $0x8] sm:$0xff]  }
 0x3a5   :  { %1222 = vmatprep.subr.bf16.mxu1 %v1577_v1 }
 0x3a6   :  { %v1343_v12 = vpop.eup %1342 }
 0x3a7   :  { %v505_v13 = vmul.f32 %v1343_v12, %v1339_v63 }
 0x3a9   :  { %v507_v14 = vpack.c.bf16 %v505_v13, %v505_v13 }
 0x3ab   :  { %1199 = vmatmul.mubr.msk.bf16.vlgmr.msra.gmra.mrb[16].mxu1 %vm483_vm2, %v507_v14 }
 0x3ac   :  { %1238 = vmatprep.mubr.msk.bf16.mxu1 %vm1578_vm0, %v1577_v1 }
 0x476   :  { %v549_v18 = vpop.f32.mrb[12].mxu1 }
 0x477   :  { %v1194_v19 = vpop.f32.mrb[13].mxu1 }
 0x478   :  { %v552_v20 = vpop.f32.mrb[14].mxu1 }
 0x479   :  { %v1195_v21 = vpop.f32.mrb[15].mxu1 }
 0x47e   :  { %v595_v22 = vpop.f32.mrb[16].mxu1 }
 0x47f   :  { %v601_v25 = vpack.c.bf16 %v595_v22, %v549_v18  ;;  %v1200_v26 = vpop.f32.mrb[17].mxu1 }
 0x480   :  { %v598_v27 = vpop.f32.mrb[18].mxu1 }
 0x481   :  { %v1201_v28 = vpop.f32.mrb[19].mxu1  ;;  %1219 = vmatmul.mubr.bf16.vlgmr.msra.gmra.mrb[4].mxu0 %v601_v25 }
 0x482   :  { %1258 = vmatprep.mubr.msk.bf16.mxu0 %vm1578_vm0, %v1577_v1  ;;  %1243 = vmatpush3.bf16.msra.mxu0 %v1328_v43 }
 0x483   :  { %1244 = vmatprep.subr.bf16.mxu0 %v1577_v1 }
 0x486   :  { %1245 = vmatpush3.bf16.msra.mxu0 %v1329_v44 }
 0x487   :  { %1246 = vmatprep.subr.bf16.mxu0 %v1577_v1 }
 0x48a   :  { %1247 = vmatpush3.bf16.msra.mxu0 %v1330_v45 }
 0x48b   :  { %1248 = vmatprep.subr.bf16.mxu0 %v1577_v1 }
 0x48e   :  { %1249 = vmatpush3.bf16.msra.mxu0 %v1331_v46 }
 0x48f   :  { %1250 = vmatprep.subr.bf16.mxu0 %v1577_v1 }
 0x492   :  { %1251 = vmatpush3.bf16.msra.mxu0 %v1332_v47 }
 0x493   :  { %1252 = vmatprep.subr.bf16.mxu0 %v1577_v1 }
 0x496   :  { %1253 = vmatpush3.bf16.msra.mxu0 %v1333_v48 }
 0x497   :  { %1254 = vmatprep.subr.bf16.mxu0 %v1577_v1 }
 0x49a   :  { %1255 = vmatpush3.bf16.msra.mxu0 %v1334_v15 }
 0x49b   :  { %1256 = vmatprep.subr.bf16.mxu0 %v1577_v1 }
 0x49e   :  { %1257 = vmatpush3.bf16.msra.mxu0 %v1335_v16 }
 0x554   :  { %v700_v29 = vpop.f32.mrb[4].mxu0 }
 0x555   :  { %v1784_v30 = vadd.f32 %v700_v29, %v1737_v23  ;;  %v1220_v31 = vpop.f32.mrb[5].mxu0  ;;  %v1320_v23 = vld [vmem:[#allocation8] sm:$0xff]  }
 0x556   :  { %v703_v32 = vpop.f32.mrb[6].mxu0  ;;  %1223 = vmatpush3.bf16.msra.mxu1 %v1320_v23  ;;  %v1097_v29 = vld [vmem:[#allocation13] ss:$0 sm:$0xff] }
 0x557   :  { %v1787_v33 = vadd.f32 %v703_v32, %v1739_v24  ;;  %711 = vadd.xlane.f32.xlu0 %v1784_v30  ;;  %v1221_v34 = vpop.f32.mrb[7].mxu0  ;;  %v717_v35 = vmul.f32 %v1784_v30, %v1784_v30  ;;  %1224 = vmatprep.subr.bf16.mxu1 %v1577_v1  ;;  %v1322_v24 = vld [vmem:[#allocation8 + $0x10] sm:$0xff]  }
 0x559   :  { %713 = vadd.xlane.f32.xlu1 %v1787_v33  ;;  %v718_v36 = vmul.f32 %v1787_v33, %v1787_v33 }
 0x55a   :  { %1225 = vmatpush3.bf16.msra.mxu1 %v1321_v37 }
 0x55b   :  { %719 = vadd.xlane.f32.xlu0 %v717_v35  ;;  %1226 = vmatprep.subr.bf16.mxu1 %v1577_v1 }
 0x55d   :  { %721 = vadd.xlane.f32.xlu1 %v718_v36 }
 0x55e   :  { %1227 = vmatpush3.bf16.msra.mxu1 %v1322_v24 }
 0x55f   :  { %1228 = vmatprep.subr.bf16.mxu1 %v1577_v1 }
 0x562   :  { %1229 = vmatpush3.bf16.msra.mxu1 %v1323_v38 }
 0x563   :  { %1230 = vmatprep.subr.bf16.mxu1 %v1577_v1 }
 0x566   :  { %1231 = vmatpush3.bf16.msra.mxu1 %v1324_v39 }
 0x567   :  { %1232 = vmatprep.subr.bf16.mxu1 %v1577_v1 }
 0x56a   :  { %1233 = vmatpush3.bf16.msra.mxu1 %v1325_v40 }
 0x56b   :  { %1234 = vmatprep.subr.bf16.mxu1 %v1577_v1 }
 0x56e   :  { %1235 = vmatpush3.bf16.msra.mxu1 %v1326_v41 }
 0x56f   :  { %1236 = vmatprep.subr.bf16.mxu1 %v1577_v1 }
 0x572   :  { %1237 = vmatpush3.bf16.msra.mxu1 %v1327_v42 }
 0x5e4   :  { %v712_v49 = vpop.xlane.xlu0 %711 }
 0x5e5   :  { %v715_v50 = vmul.f32 0.03125, %v712_v49 }
 0x5e6   :  { %v714_v51 = vpop.xlane.xlu1 %713 }
 0x5e7   :  { %v716_v52 = vmul.f32 0.03125, %v714_v51  ;;  %v725_v54 = vmul.f32 %v715_v50, %v715_v50  ;;  %v731_v2 = vsub.f32 %v1784_v30, %v715_v50 }
 0x5e8   :  { %v720_v53 = vpop.xlane.xlu0 %719 }
 0x5e9   :  { %v723_v55 = vmul.f32 0.03125, %v720_v53  ;;  %v726_v57 = vmul.f32 %v716_v52, %v716_v52  ;;  %v732_v5 = vsub.f32 %v1787_v33, %v716_v52 }
 0x5ea   :  { %v722_v56 = vpop.xlane.xlu1 %721 }
 0x5eb   :  { %v727_v58 = vsub.f32 %v723_v55, %v725_v54  ;;  %v724_v59 = vmul.f32 0.03125, %v722_v56  ;;  %v1106_v55 = vld [vmem:[#allocation14 + $0x2] ss:$0 sm:$0xff] }
 0x5ed   :  { %v729_v60 = vmax.f32 %v727_v58, 0.0  ;;  %v728_v61 = vsub.f32 %v724_v59, %v726_v57  ;;  %v1107_v59 = vld [vmem:[#allocation14 + $0x3] ss:$0 sm:$0xff] }
 0x5ef   :  { %v733_v62 = vadd.f32 1e-05, %v729_v60  ;;  %v730_v63 = vmax.f32 %v728_v61, 0.0 }
 0x5f1   :  { %1344 = vrsqrt.f32 %v733_v62  ;;  %v734_v0 = vadd.f32 1e-05, %v730_v63 }
 0x5f3   :  { %1346 = vrsqrt.f32 %v734_v0 }
 0x5fb   :  { %v1345_v3 = vpop.eup %1344 }
 0x5fc   :  { %v737_v6 = vmul.f32 %v1345_v3, %v731_v2 }
 0x5fd   :  { %v1347_v7 = vpop.eup %1346 }
 0x5fe   :  { %v738_v8 = vmul.f32 %v1347_v7, %v732_v5  ;;  %v743_v9 = vmul.f32 %v1086_v4, %v737_v6 }
 0x600   :  { %v744_v11 = vmul.f32 %v1086_v4, %v738_v8  ;;  %v749_v12 = vadd.f32 %v1087_v10, %v743_v9 }
 0x602   :  { %v750_v13 = vadd.f32 %v1087_v10, %v744_v11 }
 0x604   :  { %v751_v14 = vpack.c.bf16 %v750_v13, %v749_v12 }
 0x606   :  { %1239 = vmatmul.mubr.bf16.vlgmr.msra.gmra.mrb[20].mxu1 %v751_v14 }
 0x6d9   :  { %v857_v18 = vpop.f32.mrb[20].mxu1 }
 0x6da   :  { %v858_v19 = vadd.f32 %v1088_v17, %v857_v18  ;;  %v1240_v20 = vpop.f32.mrb[21].mxu1 }
 0x6db   :  { %v860_v21 = vpop.f32.mrb[22].mxu1 }
 0x6dc   :  { %v861_v22 = vadd.f32 %v1088_v17, %v860_v21  ;;  %v1241_v25 = vpop.f32.mrb[23].mxu1  ;;  %v864_v26 = vmax.f32 %v858_v19, 0.0 }
 0x6de   :  { %v865_v27 = vmax.f32 %v861_v22, 0.0 }
 0x6e0   :  { %v866_v28 = vpack.c.bf16 %v865_v27, %v864_v26 }
 0x6e2   :  { %1259 = vmatmul.mubr.bf16.vlgmr.msra.gmra.mrb[8].mxu0 %v866_v28 }
 0x7b5   :  { %v972_v30 = vpop.f32.mrb[8].mxu0 }
 0x7b6   :  { %v973_v31 = vadd.f32 %v1097_v29, %v972_v30  ;;  %v1260_v32 = vpop.f32.mrb[9].mxu0 }
 0x7b7   :  { %v975_v33 = vpop.f32.mrb[10].mxu0 }
 0x7b8   :  { %v979_v34 = vadd.f32 %v973_v31, %v749_v12  ;;  %v976_v1 = vadd.f32 %v1097_v29, %v975_v33  ;;  %v1261_v35 = vpop.f32.mrb[11].mxu0 }
 0x7ba   :  { %v980_v36 = vadd.f32 %v976_v1, %v750_v13  ;;  %983 = vadd.xlane.f32.xlu0 %v979_v34  ;;  %v989_v23 = vmul.f32 %v979_v34, %v979_v34 }
 0x7bc   :  { %985 = vadd.xlane.f32.xlu1 %v980_v36  ;;  %v990_v37 = vmul.f32 %v980_v36, %v980_v36 }
 0x7be   :  { %991 = vadd.xlane.f32.xlu0 %v989_v23 }
 0x7c0   :  { %993 = vadd.xlane.f32.xlu1 %v990_v37 }
 0x847   :  { %v984_v24 = vpop.xlane.xlu0 %983 }
 0x848   :  { %v987_v38 = vmul.f32 0.03125, %v984_v24 }
 0x849   :  { %v986_v39 = vpop.xlane.xlu1 %985 }
 0x84a   :  { %v988_v40 = vmul.f32 0.03125, %v986_v39  ;;  %v997_v42 = vmul.f32 %v987_v38, %v987_v38  ;;  %v1003_v53 = vsub.f32 %v979_v34, %v987_v38 }
 0x84b   :  { %v992_v41 = vpop.xlane.xlu0 %991 }
 0x84c   :  { %v995_v43 = vmul.f32 0.03125, %v992_v41  ;;  %v998_v45 = vmul.f32 %v988_v40, %v988_v40  ;;  %v1004_v56 = vsub.f32 %v980_v36, %v988_v40 }
 0x84d   :  { %v994_v44 = vpop.xlane.xlu1 %993 }
 0x84e   :  { %v999_v46 = vsub.f32 %v995_v43, %v997_v42  ;;  %v996_v47 = vmul.f32 0.03125, %v994_v44 }
 0x850   :  { %v1001_v48 = vmax.f32 %v999_v46, 0.0  ;;  %v1000_v49 = vsub.f32 %v996_v47, %v998_v45 }
 0x852   :  { %v1005_v50 = vadd.f32 1e-05, %v1001_v48  ;;  %v1002_v51 = vmax.f32 %v1000_v49, 0.0 }
 0x854   :  { %1348 = vrsqrt.f32 %v1005_v50  ;;  %v1006_v52 = vadd.f32 1e-05, %v1002_v51 }
 0x856   :  { %1350 = vrsqrt.f32 %v1006_v52 }
 0x85e   :  { %v1349_v54 = vpop.eup %1348 }
 0x85f   :  { %v1009_v57 = vmul.f32 %v1349_v54, %v1003_v53 }
 0x860   :  { %v1351_v58 = vpop.eup %1350 }
 0x861   :  { %v1010_v60 = vmul.f32 %v1351_v58, %v1004_v56  ;;  %v1015_v61 = vmul.f32 %v1106_v55, %v1009_v57 }
 0x863   :  { %v1016_v62 = vmul.f32 %v1106_v55, %v1010_v60  ;;  %v1021_v63 = vadd.f32 %v1107_v59, %v1015_v61 }
 0x865   :  { %v1022_v0 = vadd.f32 %v1107_v59, %v1016_v62  ;;  %1023 = vst [vmem:[#allocation16] sm:$0xff] %v1021_v63 }
 0x867   :  { %1024 = vst [vmem:[#allocation16 + $0x8] sm:$0xff] %v1022_v0 }
 0x868   :  { %1539 = shalt.err (!%p1536_p12)
}
 0x869   :  { %s1540_s15 = scalar_lea.hbm %s1834_s8, 256 }
 0x86a   :  { %p1541_p13 = scmp.ne.s32.totalorder %s1834_s8, %s1540_s15  ;;  %p1544_p0 = scmp.lt.u32.totalorder %s1540_s15, %s1834_s8 }
 0x86c   :  { %p1546_p1 = pnand %p1544_p0, %p1541_p13 }
 0x86e   :  { %1549 = shalt.err (!%p1546_p1)
}
 0x86f   :  { %1036 = dma.vmem_to_hbm [thread:$0]  %s1031_s2, 256, %s1834_s8, [#allocation4], %s1570_s5, %s1570_s5, %s1571_s22  }
 0x870   :  { %1560 = dma.done.wait [#allocation4], 256  }
 0x871   :  { %1561 = vsyncadd [#allocation4], 4294967040 }
 0x872   :  { %1040 = vsyncpa [#allocation3], 1 }
 0x873   :  { %1041 = vsyncpa [#allocation6], 1 }
 0x874   :  { %1042 = vsyncpa [#allocation9], 1 }
 0x875   :  { %1043 = vsyncpa [#allocation12], 1 }
 0x876   :  { %1044 = vsyncpa [#allocation15], 1 }
 0x877   :  { %1045 = vsyncpa [#allocation4], 1 }

</bundles_post_ra>
